<compile_context>
chip_gen: v7x
topology: tpu7x:2x2x1
jax: 0.10.0
libtpu: 0.0.40
codegen_flags: <defaults>
</compile_context>

<pallas_src>
import functools

import jax
import jax.numpy as jnp
from jax import lax
from jax.experimental import pallas as pl
from jax.experimental.pallas import tpu as pltpu

_MAX_TOKENS_PER_STEP = 256  # cap on G; multiple of 8 (sublane-aligned)


def _bigram_kernel(idx_ref, table_ref, out_ref):
    """One grid step: gather G embedding rows via one-hot @ table on the MXU.

    idx_ref:   (G, 1)   int32 VMEM block of token ids for this step
    table_ref: (Vr, Vp) float32 VMEM-resident padded embedding table
               (constant block index -> fetched from HBM only once)
    out_ref:   (G, Vp)  float32 lane-dense output block
    """
    g = idx_ref.shape[0]
    vr = table_ref.shape[0]
    idx = idx_ref[...]                                   # (G, 1) int32
    col = lax.broadcasted_iota(jnp.int32, (g, vr), 1)    # (G, Vr)
    one_hot = (col == idx).astype(jnp.float32)           # (G, Vr) 0/1
    # MXU matmul; HIGHEST precision keeps the 0/1-weighted row-select exact.
    out_ref[...] = jnp.dot(
        one_hot,
        table_ref[...],
        preferred_element_type=jnp.float32,
        precision=lax.Precision.HIGHEST,
    )


def pad_embedding_table(table):
    """Pad (V, V) table rows to a multiple of 8 and cols to a multiple of 128.

    Call ONCE at parameter-init time so the pad copy is not on the per-call
    path (perf-review item)."""
    v_rows, v_cols = table.shape
    vr = ((v_rows + 7) // 8) * 8
    vp = ((v_cols + 127) // 128) * 128
    if (vr, vp) != (v_rows, v_cols):
        table = jnp.pad(table, ((0, vr - v_rows), (0, vp - v_cols)))
    return table.astype(jnp.float32)


@functools.partial(jax.jit, static_argnames=("vocab_size",))
def bigram_forward(idx, table_p, *, vocab_size):
    """idx: (B, T) int; table_p: pre-padded (Vr, Vp) f32 -> (B, T, V) f32."""
    B, T = idx.shape
    N = B * T
    V = vocab_size
    Vr, Vp = table_p.shape

    # Token group size per grid step: as large as possible (fewer grid steps,
    # bigger unmasked lane-dense writebacks), capped so the output double
    # buffer stays small.  For tiny inputs this degenerates to one step.
    g = min(_MAX_TOKENS_PER_STEP, ((N + 7) // 8) * 8)
    N_pad = pl.cdiv(N, g) * g

    idx_flat = idx.reshape(N).astype(jnp.int32)
    # TODO(synk): PyTorch nn.Embedding raises on out-of-range indices; here we
    # clamp so a bad index cannot select table padding / garbage.
    idx_flat = jnp.clip(idx_flat, 0, V - 1)
    if N_pad != N:
        idx_flat = jnp.pad(idx_flat, (0, N_pad - N))
    idx_2d = idx_flat.reshape(N_pad, 1)

    logits_flat = pl.pallas_call(
        _bigram_kernel,
        out_shape=jax.ShapeDtypeStruct((N_pad, Vp), jnp.float32),
        grid=(N_pad // g,),
        in_specs=[
            # Token-id block for this step.
            pl.BlockSpec((g, 1), lambda i: (i, 0)),
            # Whole padded table, constant block index -> resident in VMEM.
            pl.BlockSpec((Vr, Vp), lambda i: (0, 0)),
        ],
        out_specs=pl.BlockSpec((g, Vp), lambda i: (i, 0)),
        compiler_params=pltpu.CompilerParams(
            dimension_semantics=("parallel",),  # shards token axis on v7x
        ),
    )(idx_2d, table_p)

    # Trim token padding and column padding, restore (B, T, V).
    return logits_flat[:N, :V].reshape(B, T, V)


if __name__ == "__main__":
    key = jax.random.PRNGKey(0)
    k_tab, k_idx = jax.random.split(key)

    vocab_size = 64
    B, T = 2, 8

    # Deterministic parameter init: nn.Embedding default is N(0, 1).
    token_embedding_table = jax.random.normal(
        k_tab, (vocab_size, vocab_size), dtype=jnp.float32
    )
    idx = jax.random.randint(k_idx, (B, T), 0, vocab_size, dtype=jnp.int32)

    # Pad the table once, at "parameter init" time (not per forward call).
    table_p = pad_embedding_table(token_embedding_table)

    logits = bigram_forward(idx, table_p, vocab_size=vocab_size)
    jax.block_until_ready(logits)

    # Correctness check against plain-JAX embedding lookup.
    ref = token_embedding_table[idx]
    assert logits.shape == (B, T, vocab_size)
    assert jnp.allclose(logits, ref, atol=1e-6), "mismatch vs reference gather"

    print("KERNEL_OK")
</pallas_src>

<mosaic_0001>
module attributes {stable_mosaic.version = 11 : i64} {
  func.func @_bigram_kernel(%arg0: i32, %arg1: memref<16x1xi32, #tpu.memory_space<vmem>>, %arg2: memref<64x128xf32, #tpu.memory_space<vmem>>, %arg3: memref<16x128xf32, #tpu.memory_space<vmem>>) attributes {dimension_semantics = [#tpu.dimension_semantics<parallel>], iteration_bounds = array<i64: 1>, scalar_prefetch = 0 : i64, scratch_operands = 0 : i64, tpu.core_type = #tpu.core_type<tc>, window_params = [{transform_indices = @transform_0, window_bounds = array<i64: 16, 1>}, {pipeline_mode = #tpu.pipeline_mode<synchronous>, transform_indices = @transform_1, window_bounds = array<i64: 64, 128>}, {transform_indices = @transform_2, window_bounds = array<i64: 16, 128>}]} {
    %c0 = arith.constant 0 : index
    %c0_0 = arith.constant 0 : index
    %0 = vector.load %arg1[%c0, %c0_0] : memref<16x1xi32, #tpu.memory_space<vmem>>, vector<16x1xi32>
    %1 = tpu.iota {dimensions = array<i32: 1>} : vector<16x64xi32>
    %2 = vector.broadcast %0 : vector<16x1xi32> to vector<16x64xi32>
    %3 = arith.cmpi eq, %1, %2 : vector<16x64xi32>
    %4 = arith.extui %3 : vector<16x64xi1> to vector<16x64xi32>
    %5 = arith.sitofp %4 : vector<16x64xi32> to vector<16x64xf32>
    %c0_1 = arith.constant 0 : index
    %c0_2 = arith.constant 0 : index
    %6 = vector.load %arg2[%c0_1, %c0_2] : memref<64x128xf32, #tpu.memory_space<vmem>>, vector<64x128xf32>
    %cst = arith.constant dense<0.000000e+00> : vector<16x128xf32>
    %7 = tpu.matmul %5, %6, %cst {dimension_numbers = #tpu.dot_dimension_numbers<[1], [0], [0], [1], [0, 0, 1, 1], [], []>, precision = #tpu.contract_precision<fp32>} : vector<16x64xf32>, vector<64x128xf32>, vector<16x128xf32> -> vector<16x128xf32>
    %c0_3 = arith.constant 0 : index
    %c0_4 = arith.constant 0 : index
    %8 = vector.load %arg3[%c0_3, %c0_4] : memref<16x128xf32, #tpu.memory_space<vmem>>, vector<16x128xf32>
    tpu.vector_store %arg3[%c0_3, %c0_4], %7 {strides = array<i32>} : memref<16x128xf32, #tpu.memory_space<vmem>>, vector<16x128xf32>,
    return
  }
  func.func @transform_0(%arg0: i32) -> (i32, i32) {
    %c0_i32 = arith.constant 0 : i32
    %c0_i32_0 = arith.constant 0 : i32
    return %arg0, %c0_i32 : i32, i32
  }
  func.func @transform_1(%arg0: i32) -> (i32, i32) {
    %c0_i32 = arith.constant 0 : i32
    %c0_i32_0 = arith.constant 0 : i32
    %c0_i32_1 = arith.constant 0 : i32
    return %c0_i32, %c0_i32_0 : i32, i32
  }
  func.func @transform_2(%arg0: i32) -> (i32, i32) {
    %c0_i32 = arith.constant 0 : i32
    %c0_i32_0 = arith.constant 0 : i32
    return %arg0, %c0_i32 : i32, i32
  }
}

</mosaic_0001>

<bundles_post_ra>
// kernel: bigram_forward.1
= control target key start
LH: loop header
LB: loop body
LE: loop exit
PB: predicated region body
PF: predicated region fallthrough
CT: control target
= control target key end

     0   :  { %7 = vsyncpa [#allocation3], 0  ;;  %s961_s9 = smov [#allocation2]   ;;  %s1049_s0 = inlined_call_operand.vmem [shape: s32[16,1], index: 0, kind: input, shape index: {}]   ;;  %s1050_s1 = inlined_call_operand.hbm [shape: f32[64,128], index: 1, kind: input, shape index: {}]   ;;  %s1051_s2 = inlined_call_operand.vmem [shape: f32[16,128], index: 2, kind: output, shape index: {}]  }
   0x1   :  { %s15_s10 = sshll.u32 %s961_s9, 4  ;;  %s937_s13 = scalar_lea.hbm %s1050_s1, 1024  ;;  %s16_s10 = int_to_ptr.vmem [resolvable:$true] %s15_s10 }
   0x2   :  { %p938_p0 = scmp.ne.s32.totalorder %s1050_s1, %s937_s13  ;;  %p941_p1 = scmp.lt.u32.totalorder %s937_s13, %s1050_s1 }
   0x4   :  { %p943_p2 = pnand %p941_p1, %p938_p0 }
   0x6   :  { %946 = shalt.err (!%p943_p2)
}
   0x7   :  { %s947_s18 = scalar_lea.vmem %s16_s10, 1024  ;;  %p952_p4 = scmp.lt.s32.totalorder %s16_s10, %s16_s10 }
   0x8   :  { %p948_p3 = scmp.ne.s32.totalorder %s16_s10, %s947_s18  ;;  %p953_p5 = scmp.lt.s32.totalorder %s947_s18, %s947_s18 }
   0xa   :  { %p954_p6 = por %p953_p5, %p952_p4 }
   0xc   :  { %p955_p7 = pnand %p954_p6, %p948_p3 }
   0xe   :  { %958 = shalt.err (!%p955_p7)
}
   0xf   :  { %s962_s19 = smov 128   ;;  %s963_s20 = smov 8  }
  0x10   :  { %21 = dma.hbm_to_vmem [thread:$0]  %s1050_s1, 1024, %s16_s10, [#allocation3], %s962_s19, %s962_s19, %s963_s20  }
  0x11   :  { %959 = dma.done.wait [#allocation3], 1024  }
  0x12   :  { %960 = vsyncadd [#allocation3], 4294966272  ;;  %v964_v0 = vmov 0   ;;  %v25_v1 = vld [vmem:[%s1049_s0] sm:$0xff]  ;;  %v42_v3 = vld [vmem:[#allocation2 + $0x8] sm:$0xff]  ;;  %vm49_vm0 = vcmask 523264  }
  0x13   :  { %936 = vset.pattern.permute.xlu0 %v964_v0  ;;  %v41_v2 = vld [vmem:[#allocation2] sm:$0xff]  ;;  %v43_v5 = vld [vmem:[#allocation2 + $0x10] sm:$0xff]  ;;  %v44_v6 = vld [vmem:[#allocation2 + $0x18] sm:$0xff]  ;;  %v60_v8 = vand.u32 4294901760, %v42_v3 }
  0x14   :  { %30 = vperm.xlu0 %936, %v25_v1   ;;  %v57_v4 = vand.u32 4294901760, %v41_v2  ;;  %v26_v7 = vld [vmem:[%s1049_s0 + $0x8] sm:$0xff]  ;;  %v63_v9 = vand.u32 4294901760, %v43_v5  ;;  %v66_v10 = vand.u32 4294901760, %v44_v6  ;;  %v45_v11 = vld [vmem:[#allocation2 + $0x20] sm:$0xff]  ;;  %v47_v17 = vld [vmem:[#allocation2 + $0x30] sm:$0xff] }
  0x15   :  { %v46_v12 = vld [vmem:[#allocation2 + $0x28] sm:$0xff]  ;;  %v69_v15 = vand.u32 4294901760, %v45_v11  ;;  %v48_v18 = vld [vmem:[#allocation2 + $0x38] sm:$0xff]  ;;  %v158_v20 = vsub.f32 %v42_v3, %v60_v8  ;;  %v75_v21 = vand.u32 4294901760, %v47_v17  ;;  %v27_v3 = vlaneseq }
  0x16   :  { %v999_v13 = vpack.c.bf16 %v60_v8, %v57_v4  ;;  %v1001_v14 = vpack.c.bf16 %v66_v10, %v63_v9  ;;  %v72_v16 = vand.u32 4294901760, %v46_v12  ;;  %v151_v19 = vsub.f32 %v41_v2, %v57_v4 }
  0x17   :  { %v78_v22 = vand.u32 4294901760, %v48_v18  ;;  %v159_v24 = vand.u32 4294901760, %v158_v20  ;;  %v165_v28 = vsub.f32 %v43_v5, %v63_v9  ;;  %v172_v29 = vsub.f32 %v44_v6, %v66_v10 }
  0x18   :  { %33 = vperm.xlu0 %936, %v26_v7   ;;  %874 = vmatprep.subr.bf16.mxu0 %v999_v13  ;;  %v152_v23 = vand.u32 4294901760, %v151_v19  ;;  %v1009_v25 = vpack.c.bf16 %v72_v16, %v69_v15  ;;  %v179_v38 = vsub.f32 %v45_v11, %v69_v15  ;;  %v186_v39 = vsub.f32 %v46_v12, %v72_v16 }
  0x19   :  { %826 = vmatprep.subr.bf16.mxu1 %v999_v13  ;;  %876 = vmatpush3.bf16.msra.mxu0 %v999_v13  ;;  %v160_v27 = vsub.f32 %v158_v20, %v159_v24  ;;  %v1013_v30 = vpack.c.bf16 %v78_v22, %v75_v21  ;;  %v166_v33 = vand.u32 4294901760, %v165_v28  ;;  %v173_v34 = vand.u32 4294901760, %v172_v29 }
  0x1a   :  { %828 = vmatpush3.bf16.msra.mxu1 %v999_v13  ;;  %878 = vmatprep.subr.bf16.mxu0 %v1001_v14  ;;  %v153_v26 = vsub.f32 %v151_v19, %v152_v23  ;;  %v889_v40 = vpack.c.bf16 %v159_v24, %v152_v23  ;;  %v180_v44 = vand.u32 4294901760, %v179_v38  ;;  %v187_v45 = vand.u32 4294901760, %v186_v39 }
  0x1b   :  { %830 = vmatprep.subr.bf16.mxu1 %v1001_v14  ;;  %v161_v32 = vand.u32 4294901760, %v160_v27  ;;  %v1017_v35 = vpack.c.bf16 %v173_v34, %v166_v33  ;;  %v167_v36 = vsub.f32 %v165_v28, %v166_v33  ;;  %v174_v37 = vsub.f32 %v172_v29, %v173_v34 }
  0x1c   :  { %v154_v31 = vand.u32 4294901760, %v153_v26  ;;  %v193_v47 = vsub.f32 %v47_v17, %v75_v21  ;;  %v200_v48 = vsub.f32 %v48_v18, %v78_v22  ;;  %v897_v49 = vpack.c.bf16 %v187_v45, %v180_v44 }
  0x1d   :  { %880 = vmatpush3.bf16.msra.mxu0 %v1001_v14  ;;  %v168_v42 = vand.u32 4294901760, %v167_v36  ;;  %v175_v43 = vand.u32 4294901760, %v174_v37  ;;  %v181_v50 = vsub.f32 %v179_v38, %v180_v44  ;;  %v188_v51 = vsub.f32 %v186_v39, %v187_v45 }
  0x1e   :  { %832 = vmatpush3.bf16.msra.mxu1 %v1001_v14  ;;  %882 = vmatprep.subr.bf16.mxu0 %v1009_v25  ;;  %v841_v41 = vpack.c.bf16 %v161_v32, %v154_v31  ;;  %v194_v52 = vand.u32 4294901760, %v193_v47  ;;  %v201_v53 = vand.u32 4294901760, %v200_v48  ;;  %v857_v63 = vpack.c.bf16 %v158_v20, %v151_v19 }
  0x1f   :  { %834 = vmatprep.subr.bf16.mxu1 %v1009_v25  ;;  %v845_v46 = vpack.c.bf16 %v175_v43, %v168_v42  ;;  %v182_v54 = vand.u32 4294901760, %v181_v50  ;;  %v189_v55 = vand.u32 4294901760, %v188_v51  ;;  %v861_v0 = vpack.c.bf16 %v172_v29, %v165_v28 }
  0x20   :  { %v901_v56 = vpack.c.bf16 %v201_v53, %v194_v52  ;;  %v195_v57 = vsub.f32 %v193_v47, %v194_v52  ;;  %v202_v58 = vsub.f32 %v200_v48, %v201_v53  ;;  %v865_v1 = vpack.c.bf16 %v186_v39, %v179_v38 }
  0x21   :  { %884 = vmatpush3.bf16.msra.mxu0 %v1009_v25  ;;  %v849_v59 = vpack.c.bf16 %v189_v55, %v182_v54  ;;  %v869_v2 = vpack.c.bf16 %v200_v48, %v193_v47  ;;  %v28_v4 = vand.u32 127, %v27_v3  ;;  %v965_v6 = vmov 0.0  }
  0x22   :  { %836 = vmatpush3.bf16.msra.mxu1 %v1009_v25  ;;  %886 = vmatprep.subr.bf16.mxu0 %v1013_v30  ;;  %v196_v60 = vand.u32 4294901760, %v195_v57  ;;  %v203_v61 = vand.u32 4294901760, %v202_v58 }
  0x23   :  { %838 = vmatprep.subr.bf16.mxu1 %v1013_v30 }
  0x24   :  { %v853_v62 = vpack.c.bf16 %v203_v61, %v196_v60 }
  0x25   :  { %888 = vmatpush3.bf16.msra.mxu0 %v1013_v30 }
  0x26   :  { %840 = vmatpush3.bf16.msra.mxu1 %v1013_v30  ;;  %890 = vmatprep.subr.bf16.mxu0 %v889_v40 }
  0x27   :  { %842 = vmatprep.subr.bf16.mxu1 %v841_v41 }
  0x93   :  { %v31_v5 = vpop.permute.xlu0 %30 }
  0x94   :  { %vm35_vm1 = vcmp.eq.s32.totalorder %v28_v4, %v31_v5 }
  0x95   :  { %v643_v7 = vsel %vm35_vm1, 1.0, %v965_v6 }
  0x96   :  { %v51_v8 = vsel %vm49_vm0, %v643_v7, 0 }
  0x97   :  { %v130_v9 = vsub.f32 %v51_v8, %v51_v8  ;;  %v34_v10 = vpop.permute.xlu0 %33 }
  0x98   :  { %vm36_vm2 = vcmp.eq.s32.totalorder %v28_v4, %v34_v10 }
  0x99   :  { %v644_v11 = vsel %vm36_vm2, 1.0, %v965_v6  ;;  %v131_v12 = vand.u32 4294901760, %v130_v9 }
  0x9a   :  { %v54_v15 = vsel %vm49_vm0, %v644_v11, 0 }
  0x9b   :  { %v140_v16 = vsub.f32 %v54_v15, %v54_v15  ;;  %784 = vmatprep.mubr.f32.mxu0 %v131_v12  ;;  %v132_v17 = vsub.f32 %v130_v9, %v131_v12 }
  0x9d   :  { %v133_v18 = vand.u32 4294901760, %v132_v17  ;;  %v141_v19 = vand.u32 4294901760, %v140_v16 }
  0x9f   :  { %727 = vmatprep.mubr.f32.mxu1 %v133_v18  ;;  %785 = vmatmul.mubr.f32.vlgmr.msra.gmra.mrb[0].mxu0 %v141_v19  ;;  %v142_v20 = vsub.f32 %v140_v16, %v141_v19 }
  0xa0   :  { %892 = vmatpush3.bf16.msra.mxu0 %v889_v40  ;;  %803 = vmatprep.mubr.msk.f32.mxu0 %vm49_vm0, %v643_v7 }
  0xa1   :  { %894 = vmatprep.subr.bf16.mxu0 %v1017_v35  ;;  %v143_v21 = vand.u32 4294901760, %v142_v20 }
  0xa3   :  { %728 = vmatmul.mubr.f32.vlgmr.msra.gmra.mrb[0].mxu1 %v143_v21 }
  0xa4   :  { %844 = vmatpush3.bf16.msra.mxu1 %v841_v41  ;;  %896 = vmatpush3.bf16.msra.mxu0 %v1017_v35 }
  0xa5   :  { %746 = vmatprep.mubr.msk.f32.mxu1 %vm49_vm0, %v643_v7  ;;  %846 = vmatprep.subr.bf16.mxu1 %v845_v46 }
  0xa6   :  { %898 = vmatprep.subr.bf16.mxu0 %v897_v49 }
  0xa8   :  { %848 = vmatpush3.bf16.msra.mxu1 %v845_v46  ;;  %900 = vmatpush3.bf16.msra.mxu0 %v897_v49 }
  0xa9   :  { %850 = vmatprep.subr.bf16.mxu1 %v849_v59  ;;  %902 = vmatprep.subr.bf16.mxu0 %v901_v56 }
  0xac   :  { %852 = vmatpush3.bf16.msra.mxu1 %v849_v59  ;;  %904 = vmatpush3.bf16.msra.mxu0 %v901_v56 }
  0xad   :  { %854 = vmatprep.subr.bf16.mxu1 %v853_v62  ;;  %906 = vmatprep.subr.bf16.mxu0 %v999_v13 }
  0xaf   :  { %804 = vmatmul.mubr.msk.f32.vlgmr.msra.gmra.mrb[0].mxu0 %vm49_vm0, %v644_v11 }
  0xb0   :  { %856 = vmatpush3.bf16.msra.mxu1 %v853_v62  ;;  %908 = vmatpush3.bf16.msra.mxu0 %v999_v13 }
  0xb1   :  { %822 = vmatprep.mubr.msk.f32.mxu0 %vm49_vm0, %v643_v7  ;;  %858 = vmatprep.subr.bf16.mxu1 %v857_v63 }
  0xb2   :  { %910 = vmatprep.subr.bf16.mxu0 %v1001_v14 }
  0xb3   :  { %747 = vmatmul.mubr.msk.f32.vlgmr.msra.gmra.mrb[0].mxu1 %vm49_vm0, %v644_v11 }
  0xb4   :  { %860 = vmatpush3.bf16.msra.mxu1 %v857_v63  ;;  %765 = vmatprep.mubr.f32.mxu1 %v130_v9 }
  0xb5   :  { %912 = vmatpush3.bf16.msra.mxu0 %v1001_v14  ;;  %862 = vmatprep.subr.bf16.mxu1 %v861_v0 }
  0xb6   :  { %914 = vmatprep.subr.bf16.mxu0 %v1009_v25 }
  0xb8   :  { %864 = vmatpush3.bf16.msra.mxu1 %v861_v0 }
  0xb9   :  { %916 = vmatpush3.bf16.msra.mxu0 %v1009_v25  ;;  %866 = vmatprep.subr.bf16.mxu1 %v865_v1 }
  0xba   :  { %918 = vmatprep.subr.bf16.mxu0 %v1013_v30 }
  0xbc   :  { %868 = vmatpush3.bf16.msra.mxu1 %v865_v1 }
  0xbd   :  { %920 = vmatpush3.bf16.msra.mxu0 %v1013_v30  ;;  %870 = vmatprep.subr.bf16.mxu1 %v869_v2 }
  0xc0   :  { %823 = vmatmul.mubr.msk.f32.vlgmr.msra.gmra.mrb[0].mxu0 %vm49_vm0, %v644_v11  ;;  %872 = vmatpush3.bf16.msra.mxu1 %v869_v2 }
  0xc3   :  { %766 = vmatmul.mubr.f32.vlgmr.msra.gmra.mrb[0].mxu1 %v140_v16 }
 0x193   :  { %v824_v13 = vpop.f32.mrb[0].mxu0 }
 0x194   :  { %v626_v22 = vpop.f32.mrb[1].mxu0 }
 0x196   :  { %v767_v14 = vpop.f32.mrb[0].mxu1 }
 0x197   :  { %v921_v23 = vadd.f32 %v824_v13, %v767_v14  ;;  %v350_v24 = vpop.f32.mrb[1].mxu1 }
 0x198   :  { %v922_v26 = vadd.f32 %v626_v22, %v350_v24 }
 0x199   :  { %637 = vst [vmem:[%s1051_s2 + $0x8] sm:$0xff] %v921_v23 }
 0x19a   :  { %636 = vst [vmem:[%s1051_s2] sm:$0xff] %v922_v26 }
 0x19b   :  { %642 = vsyncpa [#allocation3], 1 }

</bundles_post_ra>
